<compile_context>
chip_gen: v6e
topology: v6e:2x2x1
jax: 0.10.0
libtpu: 0.0.40
codegen_flags: <defaults>
</compile_context>

<pallas_src>
import functools
import math

import jax
import jax.numpy as jnp
from jax.experimental import pallas as pl
from jax.experimental.pallas import tpu as pltpu


def _vmem_limit_bytes():
    """Generation-aware scoped-VMEM limit (v7x-safe)."""
    try:
        cap = int(pltpu.get_tpu_info().vmem_capacity_bytes)
    except Exception:
        cap = 64 * 1024 * 1024
    return int(min(cap // 2, 64 * 1024 * 1024))


def _choose_tiling(m, row_bytes,
                   block_bytes=4 * 1024 * 1024,
                   chunk_bytes=512 * 1024,
                   min_steps=4):
    """Pick (TB rows/block, CR rows/in-kernel chunk, n_chunks); TB = CR*n_chunks.

    CR is sublane-aligned (multiple of 8) unless one block covers all of m, so
    in-kernel chunk slices never cross (8,128) tile boundaries.
    """
    row_bytes = max(1, row_bytes)
    cr = max(1, chunk_bytes // row_bytes)
    cr = max(8, (cr // 8) * 8)
    if cr >= m:
        return m, m, 1                       # single full-dim block, one chunk
    # Chunks per block: ~block_bytes per grid step, but keep >= min_steps grid
    # steps so the DMA pipeline (and both v7x cores) have work.
    k = max(1, block_bytes // (cr * row_bytes))
    k = min(k, max(1, m // (cr * min_steps)))
    return cr * k, cr, k


def _tv_partial_kernel(x_ref, mask_ref, o_ref, *, tb, cr, n_chunks, m_rows,
                       ragged, shift_h, shift_v, has_dx, has_dy):
    """Partial TV sum for one (TB, L) block of flattened image slabs.

    o_ref is a lane-dense (1, 8, 128) tile; the block's scalar partial sum is
    broadcast into it (full unmasked store) and read back as out[i,0,0] in glue.
    """
    L = x_ref.shape[1]
    # Boundary masks (fetched once; block index is constant across the grid):
    #   row 0: 0 where there is no right neighbour in the same image row
    #   row 1: 0 on the last image row (no lower neighbour)
    mask_h = mask_ref[0:1, :]
    mask_v = mask_ref[1:2, :]

    if ragged:
        rows = jax.lax.broadcasted_iota(jnp.int32, (cr, L), 0)
        block_row0 = pl.program_id(0) * tb

    partial = jnp.zeros((), jnp.float32)
    for c in range(n_chunks):                    # static unroll; n_chunks small
        xc = x_ref[c * cr:(c + 1) * cr, :]       # aligned static slice (view)
        if ragged:
            # Zero slabs past the true M (last grid block may over-read).
            xc = jnp.where(rows < m_rows - block_row0 - c * cr, xc, 0)
        terms = []
        if has_dx:                               # right-neighbour diffs
            dx = (pltpu.roll(xc, shift_h, axis=1) - xc).astype(jnp.float32)
            terms.append((dx * mask_h) ** 2)
        if has_dy:                               # lower-neighbour diffs
            dy = (pltpu.roll(xc, shift_v, axis=1) - xc).astype(jnp.float32)
            terms.append((dy * mask_v) ** 2)
        if terms:
            d2 = terms[0]
            for t in terms[1:]:
                d2 = d2 + t
            partial = partial + jnp.sum(d2)      # single fused reduction/chunk
    o_ref[...] = jnp.full(o_ref.shape, partial, jnp.float32)


def total_variation_loss(x):
    """TV loss of an (..., H, W) array, matching the PyTorch module."""
    *lead, H, W = x.shape
    M = int(math.prod(lead)) if lead else 1
    L = H * W
    count = M * L
    if count == 0:
        return jnp.float32(jnp.nan)              # torch .mean() of empty tensor
    x2 = x.reshape(M, L)                         # contiguous reshape: no HBM copy

    row_bytes = L * x2.dtype.itemsize
    TB, CR, n_chunks = _choose_tiling(M, row_bytes)
    G = int(pl.cdiv(M, TB))
    ragged = (G * TB != M)

    # TODO(synk): a single huge image whose minimum (8, L) block exceeds the
    # scoped VMEM budget would additionally need halo tiling of the flattened
    # axis; not needed for typical image sizes.

    # {0,1} boundary masks over the flattened (H, W) axis, built once in the
    # wrapper (avoids per-element integer mod in the kernel).
    col = jnp.arange(L, dtype=jnp.int32)
    masks = jnp.stack([(col % W != W - 1).astype(jnp.float32),
                       (col < (H - 1) * W).astype(jnp.float32)])   # (2, L)

    kernel = functools.partial(
        _tv_partial_kernel,
        tb=TB, cr=CR, n_chunks=n_chunks, m_rows=M, ragged=ragged,
        shift_h=(L - 1) % L,        # roll so out[i] = x[i+1]  (jnp.roll semantics)
        shift_v=(L - W) % L,        # roll so out[i] = x[i+W]
        has_dx=(W > 1), has_dy=(H > 1))

    cost = pl.CostEstimate(
        flops=8 * count, transcendentals=0,
        bytes_accessed=count * x2.dtype.itemsize + 2 * L * 4 + G * 8 * 128 * 4)

    partials = pl.pallas_call(
        kernel,
        out_shape=jax.ShapeDtypeStruct((G, 8, 128), jnp.float32),
        grid=(G,),
        in_specs=[pl.BlockSpec((TB, L), lambda i: (i, 0)),
                  pl.BlockSpec((2, L), lambda i: (0, 0))],
        out_specs=pl.BlockSpec((1, 8, 128), lambda i: (i, 0, 0)),
        compiler_params=pltpu.CompilerParams(
            dimension_semantics=("parallel",),
            vmem_limit_bytes=_vmem_limit_bytes()),
        cost_estimate=cost,
    )(x2, masks)

    total = jnp.sum(partials[:, 0, 0])           # tiny G-element reduction (glue)
    return total / jnp.float32(count)


def _tv_reference(x):
    """Pure-JAX mirror of the PyTorch forward (for correctness checking)."""
    xp = jnp.pad(x, ((0, 0), (0, 0), (0, 1), (0, 1)), mode="edge")
    x_diff = xp[..., :-1, :-1] - xp[..., :-1, 1:]
    y_diff = xp[..., :-1, :-1] - xp[..., 1:, :-1]
    return jnp.mean(x_diff ** 2 + y_diff ** 2)


if __name__ == "__main__":
    key = jax.random.PRNGKey(0)
    x = jax.random.normal(key, (2, 4, 16, 16), jnp.float32)   # NCHW

    loss = total_variation_loss(x)
    jax.block_until_ready(loss)

    ref = _tv_reference(x)
    assert loss.shape == ()
    assert bool(jnp.isfinite(loss))
    assert bool(jnp.allclose(loss, ref, rtol=1e-5, atol=1e-6)), (float(loss), float(ref))
    print("KERNEL_OK")
</pallas_src>

<mosaic_0001>
module attributes {stable_mosaic.version = 11 : i64} {
  func.func @_tv_partial_kernel(%arg0: i32, %arg1: memref<8x256xf32, #tpu.memory_space<vmem>>, %arg2: memref<2x256xf32, #tpu.memory_space<vmem>>, %arg3: memref<1x8x128xf32, #tpu.memory_space<vmem>>) attributes {dimension_semantics = [#tpu.dimension_semantics<parallel>], iteration_bounds = array<i64: 1>, scalar_prefetch = 0 : i64, scratch_operands = 0 : i64, tpu.core_type = #tpu.core_type<tc>, window_params = [{transform_indices = @transform_0, window_bounds = array<i64: 8, 256>}, {pipeline_mode = #tpu.pipeline_mode<synchronous>, transform_indices = @transform_1, window_bounds = array<i64: 2, 256>}, {transform_indices = @transform_2, window_bounds = array<i64: 1, 8, 128>}]} {
    %c0 = arith.constant 0 : index
    %c0_0 = arith.constant 0 : index
    %0 = vector.load %arg2[%c0, %c0_0] : memref<2x256xf32, #tpu.memory_space<vmem>>, vector<1x256xf32>
    %c1 = arith.constant 1 : index
    %c0_1 = arith.constant 0 : index
    %1 = vector.load %arg2[%c1, %c0_1] : memref<2x256xf32, #tpu.memory_space<vmem>>, vector<1x256xf32>
    %c0_2 = arith.constant 0 : index
    %c0_3 = arith.constant 0 : index
    %2 = vector.load %arg1[%c0_2, %c0_3] : memref<8x256xf32, #tpu.memory_space<vmem>>, vector<8x256xf32>
    %c255_i32 = arith.constant 255 : i32
    %3 = tpu.dynamic_rotate %2 by %c255_i32 dim 1 : vector<8x256xf32>, i32 -> vector<8x256xf32>
    %4 = arith.subf %3, %2 : vector<8x256xf32>
    %5 = vector.broadcast %0 : vector<1x256xf32> to vector<8x256xf32>
    %6 = arith.mulf %4, %5 : vector<8x256xf32>
    %7 = arith.mulf %6, %6 : vector<8x256xf32>
    %c240_i32 = arith.constant 240 : i32
    %8 = tpu.dynamic_rotate %2 by %c240_i32 dim 1 : vector<8x256xf32>, i32 -> vector<8x256xf32>
    %9 = arith.subf %8, %2 : vector<8x256xf32>
    %10 = vector.broadcast %1 : vector<1x256xf32> to vector<8x256xf32>
    %11 = arith.mulf %9, %10 : vector<8x256xf32>
    %12 = arith.mulf %11, %11 : vector<8x256xf32>
    %13 = arith.addf %7, %12 : vector<8x256xf32>
    %14 = vector.shape_cast %13 : vector<8x256xf32> to vector<1x8x256xf32>
    %cst = arith.constant dense<0.000000e+00> : vector<1xf32>
    %15 = vector.multi_reduction <add>, %14, %cst [1, 2] : vector<1x8x256xf32> to vector<1xf32>
    %16 = vector.shape_cast %15 : vector<1xf32> to vector<1x1x1xf32>
    %17 = vector.extract %16[0, 0, 0] : f32 from vector<1x1x1xf32>
    %cst_4 = arith.constant 0.000000e+00 : f32
    %18 = arith.addf %cst_4, %17 : f32
    %19 = vector.broadcast %18 : f32 to vector<1x8x128xf32>
    %c0_5 = arith.constant 0 : index
    %c0_6 = arith.constant 0 : index
    %c0_7 = arith.constant 0 : index
    %20 = vector.load %arg3[%c0_5, %c0_6, %c0_7] : memref<1x8x128xf32, #tpu.memory_space<vmem>>, vector<1x8x128xf32>
    tpu.vector_store %arg3[%c0_5, %c0_6, %c0_7], %19 {strides = array<i32>} : memref<1x8x128xf32, #tpu.memory_space<vmem>>, vector<1x8x128xf32>,
    return
  }
  func.func @transform_0(%arg0: i32) -> (i32, i32) {
    %c0_i32 = arith.constant 0 : i32
    %c0_i32_0 = arith.constant 0 : i32
    return %arg0, %c0_i32 : i32, i32
  }
  func.func @transform_1(%arg0: i32) -> (i32, i32) {
    %c0_i32 = arith.constant 0 : i32
    %c0_i32_0 = arith.constant 0 : i32
    %c0_i32_1 = arith.constant 0 : i32
    return %c0_i32, %c0_i32_0 : i32, i32
  }
  func.func @transform_2(%arg0: i32) -> (i32, i32, i32) {
    %c0_i32 = arith.constant 0 : i32
    %c0_i32_0 = arith.constant 0 : i32
    %c0_i32_1 = arith.constant 0 : i32
    return %arg0, %c0_i32, %c0_i32_0 : i32, i32, i32
  }
}

</mosaic_0001>

<bundles_post_ra>
// kernel: tpu_custom_call.1
= control target key start
LH: loop header
LB: loop body
LE: loop exit
PB: predicated region body
PF: predicated region fallthrough
CT: control target
= control target key end

     0   :  { %7 = vsyncpa [#allocation3], 0  ;;  %s224_s0 = inlined_call_operand.hbm [shape: f32[8,256], index: 0, kind: input, shape index: {}]   ;;  %s225_s1 = inlined_call_operand.hbm [shape: f32[2,256], index: 1, kind: input, shape index: {}]   ;;  %s226_s2 = inlined_call_operand.hbm [shape: f32[1,8,128], index: 2, kind: output, shape index: {}]  }
   0x1   :  { %8 = vsyncpa [#allocation6], 0 }
   0x2   :  { %9 = vsyncpa [#allocation4], 0  ;;  %s195_s9 = smov [#allocation2]   ;;  %s196_s11 = smov [#allocation5]  }
   0x3   :  { %s16_s10 = sshll.u32 %s195_s9, 4  ;;  %s26_s12 = sshll.u32 %s196_s11, 4  ;;  %s17_s10 = int_to_ptr.vmem [resolvable:$true] %s16_s10  ;;  %s27_s12 = int_to_ptr.vmem [resolvable:$true] %s26_s12 }
   0x4   :  { %s137_s13 = scalar_lea.vmem %s17_s10, 256  ;;  %p142_p1 = scmp.lt.s32.totalorder %s17_s10, %s17_s10 }
   0x5   :  { %p138_p0 = scmp.ne.s32.totalorder %s17_s10, %s137_s13  ;;  %p143_p2 = scmp.lt.s32.totalorder %s137_s13, %s137_s13 }
   0x7   :  { %p144_p3 = por %p143_p2, %p142_p1 }
   0x9   :  { %p145_p4 = pnand %p144_p3, %p138_p0 }
   0xb   :  { %148 = shalt.err (!%p145_p4)
}
   0xc   :  { %19 = dma.hbm_to_vmem [thread:$0]  %s224_s0, 256, %s17_s10, [#allocation3]  }
   0xd   :  { %s157_s16 = scalar_lea.vmem %s27_s12, 64  ;;  %p162_p6 = scmp.lt.s32.totalorder %s27_s12, %s27_s12 }
   0xe   :  { %p158_p5 = scmp.ne.s32.totalorder %s27_s12, %s157_s16  ;;  %p163_p7 = scmp.lt.s32.totalorder %s157_s16, %s157_s16 }
  0x10   :  { %p164_p8 = por %p163_p7, %p162_p6 }
  0x12   :  { %p165_p9 = pnand %p164_p8, %p158_p5 }
  0x14   :  { %168 = shalt.err (!%p165_p9)
}
  0x15   :  { %29 = dma.hbm_to_vmem [thread:$0]  %s225_s1, 64, %s27_s12, [#allocation6]  }
  0x16   :  { %189 = dma.done.wait [#allocation3], 256  }
  0x17   :  { %190 = vsyncadd [#allocation3], 4294967040 }
  0x18   :  { %191 = dma.done.wait [#allocation6], 64  }
  0x19   :  { %192 = vsyncadd [#allocation6], 4294967232  ;;  %v39_v0 = vld [vmem:[#allocation2] sm:$0xff]  ;;  %s197_s19 = smov 112   ;;  %s198_s20 = smov 127   ;;  %v40_v1 = vld [vmem:[#allocation2 + $0x8] sm:$0xff]  ;;  %v45_v2 = vlaneseq }
  0x1a   :  { %67 = vrot.lane.b32.xlu1 %v39_v0, %s197_s19  ;;  %41 = vrot.lane.b32.xlu0 %v39_v0, %s198_s20  ;;  %v38_v9 = vld [vmem:[#allocation5 + $0x1] ss:$2 sm:$0x3]  ;;  %v36_v10 = vld [vmem:[#allocation5] ss:$2 sm:$0x3] }
  0x1b   :  { %v54_v3 = vshrl.u32 %v45_v2, 7  ;;  %v46_v4 = vand.u32 127, %v45_v2  ;;  %s199_s0 = smov [#allocation7]  }
  0x1c   :  { %s112_s1 = sshll.u32 %s199_s0, 4  ;;  %s113_s1 = int_to_ptr.vmem [resolvable:$true] %s112_s1 }
  0x1d   :  { %v55_v7 = vsub.s32 0, %v54_v3  ;;  %v59_v8 = vsub.s32 1, %v54_v3  ;;  %vm71_vm0 = vcmp.lt.s32.totalorder %v46_v4, 112  ;;  %vm47_vm1 = vcmp.lt.s32.totalorder %v46_v4, 127  ;;  %s169_s22 = scalar_lea.vmem %s113_s1, 128  ;;  %p174_p11 = scmp.lt.s32.totalorder %s113_s1, %s113_s1 }
  0x1e   :  { %69 = vrot.lane.b32.xlu1 %v40_v1, %s197_s19  ;;  %43 = vrot.lane.b32.xlu0 %v40_v1, %s198_s20  ;;  %p170_p10 = scmp.ne.s32.totalorder %s113_s1, %s169_s22  ;;  %p175_p12 = scmp.lt.s32.totalorder %s169_s22, %s169_s22 }
  0x1f   :  { %v80_v12 = vrot.slane %v38_v9, %v55_v7  ;;  %v84_v13 = vrot.slane %v38_v9, %v59_v8  ;;  %v56_v15 = vrot.slane %v36_v10, %v55_v7  ;;  %v60_v16 = vrot.slane %v36_v10, %v59_v8 }
  0x20   :  { %p176_p13 = por %p175_p12, %p174_p11 }
  0x22   :  { %p177_p0 = pnand %p176_p13, %p170_p10 }
  0x8c   :  { %v68_v5 = vpop.permute.xlu1 %67  ;;  %v42_v6 = vpop.permute.xlu0 %41 }
  0x90   :  { %v70_v11 = vpop.permute.xlu1 %69  ;;  %v44_v14 = vpop.permute.xlu0 %43 }
  0x91   :  { %v72_v17 = vsel %vm71_vm0, %v68_v5, %v70_v11  ;;  %v73_v18 = vsel %vm71_vm0, %v70_v11, %v68_v5  ;;  %v48_v19 = vsel %vm47_vm1, %v42_v6, %v44_v14  ;;  %v49_v20 = vsel %vm47_vm1, %v44_v14, %v42_v6 }
  0x92   :  { %v74_v21 = vsub.f32 %v72_v17, %v39_v0  ;;  %v75_v22 = vsub.f32 %v73_v18, %v40_v1  ;;  %v50_v23 = vsub.f32 %v48_v19, %v39_v0  ;;  %v51_v24 = vsub.f32 %v49_v20, %v40_v1 }
  0x94   :  { %v87_v25 = vmul.f32 %v80_v12, %v74_v21  ;;  %v88_v26 = vmul.f32 %v84_v13, %v75_v22  ;;  %v63_v27 = vmul.f32 %v56_v15, %v50_v23  ;;  %v64_v28 = vmul.f32 %v60_v16, %v51_v24 }
  0x96   :  { %v89_v29 = vmul.f32 %v87_v25, %v87_v25  ;;  %v90_v30 = vmul.f32 %v88_v26, %v88_v26  ;;  %v65_v31 = vmul.f32 %v63_v27, %v63_v27  ;;  %v66_v32 = vmul.f32 %v64_v28, %v64_v28 }
  0x98   :  { %v91_v33 = vadd.f32 %v89_v29, %v65_v31  ;;  %v92_v34 = vadd.f32 %v90_v30, %v66_v32 }
  0x9a   :  { %v93_v35 = vadd.f32 %v92_v34, %v91_v33 }
  0x9c   :  { %94 = vadd.xlane.f32.xlu0 %v93_v35 }
 0x125   :  { %v95_v36 = vpop.xlane.xlu0 %94 }
 0x126   :  { %v96_v37 = vrot.slane %v95_v36, 4 }
 0x128   :  { %v97_v38 = vadd.f32 %v96_v37, %v95_v36 }
 0x12a   :  { %v98_v39 = vrot.slane %v97_v38, 2 }
 0x12c   :  { %v99_v40 = vadd.f32 %v98_v39, %v97_v38 }
 0x12e   :  { %v100_v41 = vrot.slane %v99_v40, 1 }
 0x130   :  { %v101_v42 = vadd.f32 %v100_v41, %v99_v40 }
 0x132   :  { %122 = vpush %v101_v42 }
 0x163   :  { %s123_s21 = spop %122 }
 0x164   :  { %v104_v43 = vstv %s123_s21 }
 0x165   :  { %105 = vst [vmem:[#allocation7] sm:$0xff] %v104_v43 }
 0x166   :  { %180 = shalt.err (!%p177_p0)
}
 0x167   :  { %115 = dma.vmem_to_hbm [thread:$0]  %s113_s1, 128, %s226_s2, [#allocation4]  }
 0x168   :  { %193 = dma.done.wait [#allocation4], 128  }
 0x169   :  { %194 = vsyncadd [#allocation4], 4294967168 }
 0x16a   :  { %119 = vsyncpa [#allocation3], 1 }
 0x16b   :  { %120 = vsyncpa [#allocation6], 1 }
 0x16c   :  { %121 = vsyncpa [#allocation4], 1 }

</bundles_post_ra>
